<compile_context>
chip_gen: v7x
topology: tpu7x:2x2x1
jax: 0.10.0
libtpu: 0.0.40
codegen_flags: <defaults>
</compile_context>

<pallas_src>
import functools
import math

import jax
import jax.numpy as jnp
from jax.experimental import pallas as pl
from jax.experimental.pallas import tpu as pltpu


def _round_up(n, m):
    return ((n + m - 1) // m) * m


def _merge_kernel(x_ref, w1_ref, b1_ref, w2_ref, b2_ref, o_ref, *, compute_dtype):
    # fc1: [x1|x2] @ W1 + b1   (single dot, K = dim1+dim2)
    x = x_ref[...].astype(compute_dtype)
    w1 = w1_ref[...].astype(compute_dtype)
    h = jnp.dot(x, w1, preferred_element_type=jnp.float32) + b1_ref[...]
    # ReLU (VPU, f32)
    h = jnp.maximum(h, 0.0)
    # fc2: h @ W2 + b2
    z = (
        jnp.dot(h.astype(compute_dtype), w2_ref[...].astype(compute_dtype),
                preferred_element_type=jnp.float32)
        + b2_ref[...]
    )
    o_ref[...] = z.astype(o_ref.dtype)


def merge_layer(x1, x2, params, *, block_rows=256, compute_dtype=jnp.float32):
    """Fused MergeLayer forward.  x1: [..., dim1], x2: [..., dim2] -> [..., dim4]."""
    w1a, w1b, b1, w2, b2 = params
    dim1, dim3 = w1a.shape
    dim2 = w1b.shape[0]
    dim4 = w2.shape[1]
    assert x1.shape[-1] == dim1 and x2.shape[-1] == dim2
    assert x1.shape[:-1] == x2.shape[:-1]

    lead = x1.shape[:-1]
    B = int(math.prod(lead)) if lead else 1
    dim12 = dim1 + dim2

    # Wrapper-side concat -> one K=dim12 matmul in the kernel.
    x = jnp.concatenate([x1.reshape(B, dim1), x2.reshape(B, dim2)], axis=-1)
    w1 = jnp.concatenate([w1a, w1b], axis=0)

    # Lane-pad hidden / output feature dims to multiples of 128 (exact: zero pads).
    dim3p = _round_up(dim3, 128)
    dim4p = _round_up(dim4, 128)
    w1p = jnp.pad(w1, ((0, 0), (0, dim3p - dim3)))
    b1p = jnp.pad(b1, ((0, 0), (0, dim3p - dim3)))
    w2p = jnp.pad(w2, ((0, dim3p - dim3), (0, dim4p - dim4)))
    b2p = jnp.pad(b2, ((0, 0), (0, dim4p - dim4)))

    # Batch tiling: TB multiple of 8 (f32 sublane); pad B so the last tile is full
    # (padded rows compute garbage that is sliced off — never out of bounds).
    TB = max(8, min(block_rows, _round_up(B, 8)))
    Bp = _round_up(B, TB)
    if Bp != B:
        x = jnp.pad(x, ((0, Bp - B), (0, 0)))

    grid = (Bp // TB,)
    flops = 2 * Bp * (dim12 * dim3p + dim3p * dim4p)
    bytes_accessed = 4 * (
        Bp * dim12 + Bp * dim4p + dim12 * dim3p + dim3p * dim4p + dim3p + dim4p
    )

    out = pl.pallas_call(
        functools.partial(_merge_kernel, compute_dtype=compute_dtype),
        out_shape=jax.ShapeDtypeStruct((Bp, dim4p), x1.dtype),
        grid=grid,
        in_specs=[
            pl.BlockSpec((TB, dim12), lambda i: (i, 0)),      # activations: tiled on batch
            pl.BlockSpec((dim12, dim3p), lambda i: (0, 0)),   # W1: resident
            pl.BlockSpec((1, dim3p), lambda i: (0, 0)),       # b1
            pl.BlockSpec((dim3p, dim4p), lambda i: (0, 0)),   # W2
            pl.BlockSpec((1, dim4p), lambda i: (0, 0)),       # b2
        ],
        out_specs=pl.BlockSpec((TB, dim4p), lambda i: (i, 0)),
        compiler_params=pltpu.CompilerParams(
            dimension_semantics=("parallel",),      # megacore-sharded batch on v7x
            vmem_limit_bytes=64 * 1024 * 1024,
        ),
        cost_estimate=pl.CostEstimate(
            flops=flops, transcendentals=0, bytes_accessed=bytes_accessed
        ),
    )(x, w1p, b1p, w2p, b2p)

    out = out[:B, :dim4]
    return out.reshape(*lead, dim4)


def init_merge_layer_params(key, dim1, dim2, dim3, dim4, dtype=jnp.float32):
    """Deterministic init matching torch: xavier_normal_ weights, default uniform biases."""
    k1, k2, k3, k4 = jax.random.split(key, 4)

    # fc1: Linear(dim1 + dim2, dim3), xavier_normal_ weight
    fan_in1, fan_out1 = dim1 + dim2, dim3
    std1 = math.sqrt(2.0 / (fan_in1 + fan_out1))
    w1 = std1 * jax.random.normal(k1, (fan_in1, fan_out1), dtype)  # already [in, out]
    w1a, w1b = w1[:dim1, :], w1[dim1:, :]
    bound1 = 1.0 / math.sqrt(fan_in1)
    b1 = jax.random.uniform(k2, (1, dim3), dtype, -bound1, bound1)

    # fc2: Linear(dim3, dim4), xavier_normal_ weight
    fan_in2, fan_out2 = dim3, dim4
    std2 = math.sqrt(2.0 / (fan_in2 + fan_out2))
    w2 = std2 * jax.random.normal(k3, (fan_in2, fan_out2), dtype)
    bound2 = 1.0 / math.sqrt(fan_in2)
    b2 = jax.random.uniform(k4, (1, dim4), dtype, -bound2, bound2)

    return (w1a, w1b, b1, w2, b2)


def _reference(x1, x2, params):
    """Plain-JAX reference of the PyTorch forward (non_linear=True)."""
    w1a, w1b, b1, w2, b2 = params
    x = jnp.concatenate([x1, x2], axis=-1)
    w1 = jnp.concatenate([w1a, w1b], axis=0)
    h = jnp.maximum(x @ w1 + b1[0], 0.0)
    return h @ w2 + b2[0]


if __name__ == "__main__":
    # Shapes consistent with the module: dim1=dim2=32, dim3=64, dim4=32.
    dim1, dim2, dim3, dim4 = 32, 32, 64, 32

    key = jax.random.PRNGKey(0)
    kp, kx1, kx2, ky1, ky2 = jax.random.split(key, 5)
    params = init_merge_layer_params(kp, dim1, dim2, dim3, dim4)

    # --- small batch (single grid point) ---
    batch = 8
    x1 = jax.random.normal(kx1, (batch, dim1), jnp.float32)
    x2 = jax.random.normal(kx2, (batch, dim2), jnp.float32)
    z = merge_layer(x1, x2, params)
    jax.block_until_ready(z)
    z_ref = _reference(x1, x2, params)
    assert z.shape == (batch, dim4)
    assert jnp.allclose(z, z_ref, atol=1e-5, rtol=1e-5)

    # --- larger, non-multiple-of-tile batch (exercises grid + batch padding) ---
    big = 600
    y1 = jax.random.normal(ky1, (big, dim1), jnp.float32)
    y2 = jax.random.normal(ky2, (big, dim2), jnp.float32)
    zb = merge_layer(y1, y2, params)
    jax.block_until_ready(zb)
    zb_ref = _reference(y1, y2, params)
    assert zb.shape == (big, dim4)
    assert jnp.allclose(zb, zb_ref, atol=1e-5, rtol=1e-5)

    # --- bf16 MXU path (looser tolerance vs the f32 reference) ---
    zb16 = merge_layer(y1, y2, params, compute_dtype=jnp.bfloat16)
    jax.block_until_ready(zb16)
    assert jnp.allclose(zb16, zb_ref, atol=5e-2, rtol=5e-2)

    print("KERNEL_OK")
</pallas_src>

<mosaic_0001>
module attributes {stable_mosaic.version = 11 : i64} {
  func.func @_merge_kernel(%arg0: i32, %arg1: memref<8x64xf32, #tpu.memory_space<vmem>>, %arg2: memref<64x128xf32, #tpu.memory_space<vmem>>, %arg3: memref<1x128xf32, #tpu.memory_space<vmem>>, %arg4: memref<128x128xf32, #tpu.memory_space<vmem>>, %arg5: memref<1x128xf32, #tpu.memory_space<vmem>>, %arg6: memref<8x128xf32, #tpu.memory_space<vmem>>) attributes {dimension_semantics = [#tpu.dimension_semantics<parallel>], iteration_bounds = array<i64: 1>, scalar_prefetch = 0 : i64, scratch_operands = 0 : i64, tpu.core_type = #tpu.core_type<tc>, window_params = [{transform_indices = @transform_0, window_bounds = array<i64: 8, 64>}, {pipeline_mode = #tpu.pipeline_mode<synchronous>, transform_indices = @transform_1, window_bounds = array<i64: 64, 128>}, {pipeline_mode = #tpu.pipeline_mode<synchronous>, transform_indices = @transform_2, window_bounds = array<i64: 1, 128>}, {pipeline_mode = #tpu.pipeline_mode<synchronous>, transform_indices = @transform_3, window_bounds = array<i64: 128, 128>}, {pipeline_mode = #tpu.pipeline_mode<synchronous>, transform_indices = @transform_4, window_bounds = array<i64: 1, 128>}, {transform_indices = @transform_5, window_bounds = array<i64: 8, 128>}]} {
    %c0 = arith.constant 0 : index
    %c0_0 = arith.constant 0 : index
    %0 = vector.load %arg1[%c0, %c0_0] : memref<8x64xf32, #tpu.memory_space<vmem>>, vector<8x64xf32>
    %c0_1 = arith.constant 0 : index
    %c0_2 = arith.constant 0 : index
    %1 = vector.load %arg2[%c0_1, %c0_2] : memref<64x128xf32, #tpu.memory_space<vmem>>, vector<64x128xf32>
    %cst = arith.constant dense<0.000000e+00> : vector<8x128xf32>
    %2 = tpu.matmul %0, %1, %cst {dimension_numbers = #tpu.dot_dimension_numbers<[1], [0], [0], [1], [0, 0, 1, 1], [], []>} : vector<8x64xf32>, vector<64x128xf32>, vector<8x128xf32> -> vector<8x128xf32>
    %c0_3 = arith.constant 0 : index
    %c0_4 = arith.constant 0 : index
    %3 = vector.load %arg3[%c0_3, %c0_4] : memref<1x128xf32, #tpu.memory_space<vmem>>, vector<1x128xf32>
    %4 = vector.broadcast %3 : vector<1x128xf32> to vector<8x128xf32>
    %5 = arith.addf %2, %4 : vector<8x128xf32>
    %cst_5 = arith.constant 0.000000e+00 : f32
    %6 = vector.broadcast %cst_5 : f32 to vector<8x128xf32>
    %7 = arith.maximumf %5, %6 : vector<8x128xf32>
    %c0_6 = arith.constant 0 : index
    %c0_7 = arith.constant 0 : index
    %8 = vector.load %arg4[%c0_6, %c0_7] : memref<128x128xf32, #tpu.memory_space<vmem>>, vector<128x128xf32>
    %cst_8 = arith.constant dense<0.000000e+00> : vector<8x128xf32>
    %9 = tpu.matmul %7, %8, %cst_8 {dimension_numbers = #tpu.dot_dimension_numbers<[1], [0], [0], [1], [0, 0, 1, 1], [], []>} : vector<8x128xf32>, vector<128x128xf32>, vector<8x128xf32> -> vector<8x128xf32>
    %c0_9 = arith.constant 0 : index
    %c0_10 = arith.constant 0 : index
    %10 = vector.load %arg5[%c0_9, %c0_10] : memref<1x128xf32, #tpu.memory_space<vmem>>, vector<1x128xf32>
    %11 = vector.broadcast %10 : vector<1x128xf32> to vector<8x128xf32>
    %12 = arith.addf %9, %11 : vector<8x128xf32>
    %c0_11 = arith.constant 0 : index
    %c0_12 = arith.constant 0 : index
    %13 = vector.load %arg6[%c0_11, %c0_12] : memref<8x128xf32, #tpu.memory_space<vmem>>, vector<8x128xf32>
    tpu.vector_store %arg6[%c0_11, %c0_12], %12 {strides = array<i32>} : memref<8x128xf32, #tpu.memory_space<vmem>>, vector<8x128xf32>,
    return
  }
  func.func @transform_0(%arg0: i32) -> (i32, i32) {
    %c0_i32 = arith.constant 0 : i32
    %c0_i32_0 = arith.constant 0 : i32
    return %arg0, %c0_i32 : i32, i32
  }
  func.func @transform_1(%arg0: i32) -> (i32, i32) {
    %c0_i32 = arith.constant 0 : i32
    %c0_i32_0 = arith.constant 0 : i32
    %c0_i32_1 = arith.constant 0 : i32
    return %c0_i32, %c0_i32_0 : i32, i32
  }
  func.func @transform_2(%arg0: i32) -> (i32, i32) {
    %c0_i32 = arith.constant 0 : i32
    %c0_i32_0 = arith.constant 0 : i32
    %c0_i32_1 = arith.constant 0 : i32
    return %c0_i32, %c0_i32_0 : i32, i32
  }
  func.func @transform_3(%arg0: i32) -> (i32, i32) {
    %c0_i32 = arith.constant 0 : i32
    %c0_i32_0 = arith.constant 0 : i32
    %c0_i32_1 = arith.constant 0 : i32
    return %c0_i32, %c0_i32_0 : i32, i32
  }
  func.func @transform_4(%arg0: i32) -> (i32, i32) {
    %c0_i32 = arith.constant 0 : i32
    %c0_i32_0 = arith.constant 0 : i32
    %c0_i32_1 = arith.constant 0 : i32
    return %c0_i32, %c0_i32_0 : i32, i32
  }
  func.func @transform_5(%arg0: i32) -> (i32, i32) {
    %c0_i32 = arith.constant 0 : i32
    %c0_i32_0 = arith.constant 0 : i32
    return %arg0, %c0_i32 : i32, i32
  }
}

</mosaic_0001>

<bundles_post_ra>
// kernel: tpu_custom_call.1
= control target key start
LH: loop header
LB: loop body
LE: loop exit
PB: predicated region body
PF: predicated region fallthrough
CT: control target
= control target key end

     0   :  { %10 = vsyncpa [#allocation3], 0  ;;  %s668_s0 = inlined_call_operand.hbm [shape: f32[8,64], index: 0, kind: input, shape index: {}]   ;;  %s669_s1 = inlined_call_operand.hbm [shape: f32[64,128], index: 1, kind: input, shape index: {}]   ;;  %s670_s2 = inlined_call_operand.hbm [shape: f32[1,128], index: 2, kind: input, shape index: {}]   ;;  %s671_s3 = inlined_call_operand.hbm [shape: f32[128,128], index: 3, kind: input, shape index: {}]   ;;  %s672_s4 = inlined_call_operand.hbm [shape: f32[1,128], index: 4, kind: input, shape index: {}]   ;;  %s673_s5 = inlined_call_operand.hbm [shape: f32[8,128], index: 5, kind: output, shape index: {}]  }
   0x1   :  { %11 = vsyncpa [#allocation6], 0 }
   0x2   :  { %12 = vsyncpa [#allocation9], 0 }
   0x3   :  { %13 = vsyncpa [#allocation4], 0  ;;  %s555_s18 = smov [#allocation5]   ;;  %s415_s22 = scalar_lea.hbm %s669_s1, 1024 }
   0x4   :  { %s29_s19 = sshll.u32 %s555_s18, 4  ;;  %p416_p0 = scmp.ne.s32.totalorder %s669_s1, %s415_s22  ;;  %s30_s19 = int_to_ptr.vmem [resolvable:$true] %s29_s19 }
   0x5   :  { %p419_p1 = scmp.lt.u32.totalorder %s415_s22, %s669_s1 }
   0x7   :  { %p421_p2 = pnand %p419_p1, %p416_p0 }
   0x9   :  { %424 = shalt.err (!%p421_p2)
}
   0xa   :  { %s425_s27 = scalar_lea.vmem %s30_s19, 1024  ;;  %p430_p4 = scmp.lt.s32.totalorder %s30_s19, %s30_s19 }
   0xb   :  { %p426_p3 = scmp.ne.s32.totalorder %s30_s19, %s425_s27  ;;  %p431_p5 = scmp.lt.s32.totalorder %s425_s27, %s425_s27 }
   0xd   :  { %p432_p6 = por %p431_p5, %p430_p4 }
   0xf   :  { %p433_p7 = pnand %p432_p6, %p426_p3 }
  0x11   :  { %436 = shalt.err (!%p433_p7)
}
  0x12   :  { %s556_s28 = smov 128   ;;  %s557_s29 = smov 8  }
  0x13   :  { %35 = dma.hbm_to_vmem [thread:$0]  %s669_s1, 1024, %s30_s19, [#allocation6], %s556_s28, %s556_s28, %s557_s29  }
  0x14   :  { %s558_s7 = smov [#allocation8]   ;;  %s559_s9 = smov [#allocation2]  }
  0x15   :  { %s51_s8 = sshll.u32 %s558_s7, 4  ;;  %s20_s10 = sshll.u32 %s559_s9, 4  ;;  %s52_s8 = int_to_ptr.vmem [resolvable:$true] %s51_s8  ;;  %s21_s10 = int_to_ptr.vmem [resolvable:$true] %s20_s10 }
  0x16   :  { %s437_s13 = scalar_lea.hbm %s671_s3, 2048 }
  0x17   :  { %p438_p8 = scmp.ne.s32.totalorder %s671_s3, %s437_s13  ;;  %p441_p9 = scmp.lt.u32.totalorder %s437_s13, %s671_s3 }
  0x19   :  { %p443_p10 = pnand %p441_p9, %p438_p8 }
  0x1b   :  { %446 = shalt.err (!%p443_p10)
}
  0x1c   :  { %s447_s1 = scalar_lea.vmem %s52_s8, 2048  ;;  %p452_p12 = scmp.lt.s32.totalorder %s52_s8, %s52_s8 }
  0x1d   :  { %p448_p11 = scmp.ne.s32.totalorder %s52_s8, %s447_s1  ;;  %p453_p13 = scmp.lt.s32.totalorder %s447_s1, %s447_s1 }
  0x1f   :  { %p454_p0 = por %p453_p13, %p452_p12 }
  0x21   :  { %p455_p1 = pnand %p454_p0, %p448_p11 }
  0x23   :  { %458 = shalt.err (!%p455_p1)
}
  0x24   :  { %57 = dma.hbm_to_vmem [thread:$0]  %s671_s3, 2048, %s52_s8, [#allocation9], %s556_s28, %s556_s28, %s557_s29  }
  0x25   :  { %s459_s22 = scalar_lea.hbm %s668_s0, 128 }
  0x26   :  { %p460_p2 = scmp.ne.s32.totalorder %s668_s0, %s459_s22  ;;  %p463_p3 = scmp.lt.u32.totalorder %s459_s22, %s668_s0 }
  0x28   :  { %p465_p4 = pnand %p463_p3, %p460_p2 }
  0x2a   :  { %468 = shalt.err (!%p465_p4)
}
  0x2b   :  { %s469_s27 = scalar_lea.vmem %s21_s10, 128  ;;  %p474_p6 = scmp.lt.s32.totalorder %s21_s10, %s21_s10 }
  0x2c   :  { %p470_p5 = scmp.ne.s32.totalorder %s21_s10, %s469_s27  ;;  %p475_p7 = scmp.lt.s32.totalorder %s469_s27, %s469_s27 }
  0x2e   :  { %p476_p8 = por %p475_p7, %p474_p6 }
  0x30   :  { %p477_p9 = pnand %p476_p8, %p470_p5 }
  0x32   :  { %480 = shalt.err (!%p477_p9)
}
  0x33   :  { %23 = dma.hbm_to_vmem [thread:$0]  %s668_s0, 128, %s21_s10, [#allocation3]  }
  0x34   :  { %s560_s29 = smov [#allocation7]   ;;  %s561_s6 = smov [#allocation10]  }
  0x35   :  { %s42_s30 = sshll.u32 %s560_s29, 4  ;;  %s64_s7 = sshll.u32 %s561_s6, 4  ;;  %s43_s30 = int_to_ptr.vmem [resolvable:$true] %s42_s30  ;;  %s65_s7 = int_to_ptr.vmem [resolvable:$true] %s64_s7 }
  0x36   :  { %s481_s11 = scalar_lea.hbm %s670_s2, 16 }
  0x37   :  { %p482_p10 = scmp.ne.s32.totalorder %s670_s2, %s481_s11  ;;  %p485_p11 = scmp.lt.u32.totalorder %s481_s11, %s670_s2 }
  0x39   :  { %p487_p12 = pnand %p485_p11, %p482_p10 }
  0x3b   :  { %490 = shalt.err (!%p487_p12)
}
  0x3c   :  { %s491_s0 = scalar_lea.vmem %s43_s30, 16  ;;  %s495_s10 = scalar_lea.vmem %s43_s30, 32 }
  0x3d   :  { %p492_p13 = scmp.ne.s32.totalorder %s43_s30, %s491_s0  ;;  %p496_p0 = scmp.lt.s32.totalorder %s43_s30, %s43_s30 }
  0x3e   :  { %p497_p1 = scmp.lt.s32.totalorder %s495_s10, %s491_s0 }
  0x40   :  { %p498_p2 = por %p497_p1, %p496_p0 }
  0x42   :  { %p499_p3 = pnand %p498_p2, %p492_p13 }
  0x44   :  { %502 = shalt.err (!%p499_p3)
}
  0x45   :  { %45 = dma.hbm_to_vmem [thread:$0]  %s670_s2, 16, %s43_s30, [#allocation6]  }
  0x46   :  { %s503_s19 = scalar_lea.hbm %s672_s4, 16 }
  0x47   :  { %p504_p4 = scmp.ne.s32.totalorder %s672_s4, %s503_s19  ;;  %p507_p5 = scmp.lt.u32.totalorder %s503_s19, %s672_s4 }
  0x49   :  { %p509_p6 = pnand %p507_p5, %p504_p4 }
  0x4b   :  { %512 = shalt.err (!%p509_p6)
}
  0x4c   :  { %s513_s24 = scalar_lea.vmem %s65_s7, 16  ;;  %s517_s25 = scalar_lea.vmem %s65_s7, 32 }
  0x4d   :  { %p514_p7 = scmp.ne.s32.totalorder %s65_s7, %s513_s24  ;;  %p518_p8 = scmp.lt.s32.totalorder %s65_s7, %s65_s7 }
  0x4e   :  { %p519_p9 = scmp.lt.s32.totalorder %s517_s25, %s513_s24 }
  0x50   :  { %p520_p10 = por %p519_p9, %p518_p8 }
  0x52   :  { %p521_p11 = pnand %p520_p10, %p514_p7 }
  0x54   :  { %524 = shalt.err (!%p521_p11)
}
  0x55   :  { %67 = dma.hbm_to_vmem [thread:$0]  %s672_s4, 16, %s65_s7, [#allocation9]  }
  0x56   :  { %547 = dma.done.wait [#allocation3], 128  }
  0x57   :  { %548 = vsyncadd [#allocation3], 4294967168 }
  0x58   :  { %549 = dma.done.wait [#allocation6], 1040  }
  0x59   :  { %550 = vsyncadd [#allocation6], 4294966256 }
  0x5a   :  { %551 = dma.done.wait [#allocation9], 2064  }
  0x5b   :  { %552 = vsyncadd [#allocation9], 4294965232  ;;  %v562_v0 = vmov 0.0|0.0   ;;  %vm563_vm0 = vmmov 0   ;;  %v564_v1 = vmov 0.0   ;;  %v84_v2 = vld [vmem:[#allocation5] sm:$0xff] }
  0x5c   :  { %368 = vmatprep.subr.bf16.mxu0 %v562_v0  ;;  %330 = vmatprep.mubr.msk.f32.mxu0 %vm563_vm0, %v564_v1  ;;  %v85_v3 = vld [vmem:[#allocation5 + $0x8] sm:$0xff]  ;;  %v86_v4 = vld [vmem:[#allocation5 + $0x10] sm:$0xff]  ;;  %v87_v6 = vld [vmem:[#allocation5 + $0x18] sm:$0xff]  ;;  %vm99_vm1 = vcmask 523264   ;;  %s565_s4 = smov [#allocation11]  }
  0x5d   :  { %380 = vmatprep.subr.bf16.mxu1 %v562_v0  ;;  %365 = vmatprep.mubr.msk.f32.mxu1 %vm563_vm0, %v564_v1  ;;  %v369_v5 = vpack.c.bf16 %v85_v3, %v84_v2  ;;  %v372_v7 = vpack.c.bf16 %v87_v6, %v86_v4  ;;  %v174_v8 = vld [vmem:[#allocation8] sm:$0xff]  ;;  %v175_v9 = vld [vmem:[#allocation8 + $0x8] sm:$0xff]  ;;  %v176_v10 = vld [vmem:[#allocation8 + $0x10] sm:$0xff]  ;;  %s274_s27 = sshll.u32 %s565_s4, 4  ;;  %s275_s27 = int_to_ptr.vmem [resolvable:$true] %s274_s27 }
  0x5e   :  { %v88_v11 = vld [vmem:[#allocation5 + $0x20] sm:$0xff]  ;;  %v89_v12 = vld [vmem:[#allocation5 + $0x28] sm:$0xff]  ;;  %v381_v13 = vpack.c.bf16 %v175_v9, %v174_v8  ;;  %v90_v19 = vld [vmem:[#allocation5 + $0x30] sm:$0xff]  ;;  %s525_s3 = scalar_lea.vmem %s275_s27, 128  ;;  %p530_p13 = scmp.lt.s32.totalorder %s275_s27, %s275_s27 }
  0x5f   :  { %370 = vmatpush3.bf16.msra.mxu0 %v369_v5  ;;  %v177_v14 = vld [vmem:[#allocation8 + $0x18] sm:$0xff]  ;;  %v375_v16 = vpack.c.bf16 %v89_v12, %v88_v11  ;;  %v178_v17 = vld [vmem:[#allocation8 + $0x20] sm:$0xff]  ;;  %v179_v18 = vld [vmem:[#allocation8 + $0x28] sm:$0xff]  ;;  %p526_p12 = scmp.ne.s32.totalorder %s275_s27, %s525_s3  ;;  %p531_p0 = scmp.lt.s32.totalorder %s525_s3, %s525_s3 }
  0x60   :  { %371 = vmatprep.subr.bf16.mxu0 %v562_v0  ;;  %382 = vmatpush3.bf16.msra.mxu1 %v381_v13  ;;  %v384_v15 = vpack.c.bf16 %v177_v14, %v176_v10  ;;  %v91_v20 = vld [vmem:[#allocation5 + $0x38] sm:$0xff]  ;;  %v387_v21 = vpack.c.bf16 %v179_v18, %v178_v17  ;;  %v182_v27 = vld [vmem:[#allocation8 + $0x40] sm:$0xff]  ;;  %v183_v28 = vld [vmem:[#allocation8 + $0x48] sm:$0xff] }
  0x61   :  { %383 = vmatprep.subr.bf16.mxu1 %v562_v0  ;;  %v378_v22 = vpack.c.bf16 %v91_v20, %v90_v19  ;;  %v180_v23 = vld [vmem:[#allocation8 + $0x30] sm:$0xff]  ;;  %v181_v24 = vld [vmem:[#allocation8 + $0x38] sm:$0xff]  ;;  %v393_v29 = vpack.c.bf16 %v183_v28, %v182_v27  ;;  %v186_v33 = vld [vmem:[#allocation8 + $0x60] sm:$0xff]  ;;  %p532_p1 = por %p531_p0, %p530_p13 }
  0x62   :  { %v390_v25 = vpack.c.bf16 %v181_v24, %v180_v23  ;;  %v83_v26 = vld [vmem:[#allocation2] sm:$0xff]  ;;  %v187_v34 = vld [vmem:[#allocation8 + $0x68] sm:$0xff]  ;;  %v285_v39 = vld [vmem:[#allocation7] ss:$0 sm:$0xff] }
  0x63   :  { %373 = vmatpush3.bf16.msra.mxu0 %v372_v7  ;;  %v184_v30 = vld [vmem:[#allocation8 + $0x50] sm:$0xff]  ;;  %v185_v31 = vld [vmem:[#allocation8 + $0x58] sm:$0xff]  ;;  %v399_v35 = vpack.c.bf16 %v187_v34, %v186_v33  ;;  %v287_v44 = vld [vmem:[#allocation10] ss:$0 sm:$0xff]  ;;  %p533_p2 = pnand %p532_p1, %p526_p12 }
  0x64   :  { %374 = vmatprep.subr.bf16.mxu0 %v562_v0  ;;  %385 = vmatpush3.bf16.msra.mxu1 %v384_v15  ;;  %v396_v32 = vpack.c.bf16 %v185_v31, %v184_v30  ;;  %v188_v36 = vld [vmem:[#allocation8 + $0x70] sm:$0xff]  ;;  %v189_v37 = vld [vmem:[#allocation8 + $0x78] sm:$0xff] }
  0x65   :  { %386 = vmatprep.subr.bf16.mxu1 %v562_v0  ;;  %v402_v38 = vpack.c.bf16 %v189_v37, %v188_v36 }
  0x67   :  { %376 = vmatpush3.bf16.msra.mxu0 %v375_v16 }
  0x68   :  { %377 = vmatprep.subr.bf16.mxu0 %v562_v0  ;;  %388 = vmatpush3.bf16.msra.mxu1 %v387_v21 }
  0x69   :  { %389 = vmatprep.subr.bf16.mxu1 %v562_v0 }
  0x6b   :  { %379 = vmatpush3.bf16.msra.mxu0 %v378_v22 }
  0x6c   :  { %391 = vmatpush3.bf16.msra.mxu1 %v390_v25 }
  0x6d   :  { %392 = vmatprep.subr.bf16.mxu1 %v562_v0 }
  0x6e   :  { %331 = vmatmul.mubr.msk.f32.vlgmr.msra.gmra.mrb[0].mxu0 %vm99_vm1, %v83_v26 }
  0x70   :  { %394 = vmatpush3.bf16.msra.mxu1 %v393_v29 }
  0x71   :  { %395 = vmatprep.subr.bf16.mxu1 %v562_v0 }
  0x74   :  { %397 = vmatpush3.bf16.msra.mxu1 %v396_v32 }
  0x75   :  { %398 = vmatprep.subr.bf16.mxu1 %v562_v0 }
  0x78   :  { %400 = vmatpush3.bf16.msra.mxu1 %v399_v35 }
  0x79   :  { %401 = vmatprep.subr.bf16.mxu1 %v562_v0 }
  0x7c   :  { %403 = vmatpush3.bf16.msra.mxu1 %v402_v38 }
 0x141   :  { %v169_v40 = vpop.f32.mrb[0].mxu0 }
 0x142   :  { %v170_v41 = vadd.f32 %v285_v39, %v169_v40  ;;  %v332_v42 = vpop.f32.mrb[1].mxu0 }
 0x144   :  { %v173_v43 = vmax.f32 %v170_v41, 0.0 }
 0x146   :  { %366 = vmatmul.mubr.f32.vlgmr.msra.gmra.mrb[0].mxu1 %v173_v43 }
 0x219   :  { %v263_v45 = vpop.f32.mrb[0].mxu1 }
 0x21a   :  { %v264_v46 = vadd.f32 %v287_v44, %v263_v45  ;;  %v367_v47 = vpop.f32.mrb[1].mxu1 }
 0x21c   :  { %267 = vst [vmem:[#allocation11] sm:$0xff] %v264_v46 }
 0x21d   :  { %536 = shalt.err (!%p533_p2)
}
 0x21e   :  { %s537_s30 = scalar_lea.hbm %s673_s5, 128 }
 0x21f   :  { %p538_p3 = scmp.ne.s32.totalorder %s673_s5, %s537_s30  ;;  %p541_p4 = scmp.lt.u32.totalorder %s537_s30, %s673_s5 }
 0x221   :  { %p543_p5 = pnand %p541_p4, %p538_p3 }
 0x223   :  { %546 = shalt.err (!%p543_p5)
}
 0x224   :  { %277 = dma.vmem_to_hbm [thread:$0]  %s275_s27, 128, %s673_s5, [#allocation4]  }
 0x225   :  { %553 = dma.done.wait [#allocation4], 128  }
 0x226   :  { %554 = vsyncadd [#allocation4], 4294967168 }
 0x227   :  { %281 = vsyncpa [#allocation3], 1 }
 0x228   :  { %282 = vsyncpa [#allocation6], 1 }
 0x229   :  { %283 = vsyncpa [#allocation9], 1 }
 0x22a   :  { %284 = vsyncpa [#allocation4], 1 }

</bundles_post_ra>
